<compile_context>
chip_gen: v7x
topology: tpu7x:2x2x1
jax: 0.10.0
libtpu: 0.0.40
codegen_flags: <defaults>
</compile_context>

<pallas_src>
import functools

import jax
import jax.numpy as jnp
from jax.experimental import pallas as pl
from jax.experimental.pallas import tpu as pltpu

IN_FEATURES = 768      # state: Linear(768, 48)
STATE_FEATURES = 48
NUM_CLASSES = 5        # critic: Linear(48, 5)

LANE = 128
SUBLANE = 8


def _round_up(x, m):
    return ((x + m - 1) // m) * m


# ----------------------------------------------------------------------------
# Fused kernel: logits = relu(x @ W1 + b1) @ W2 + b2
# ----------------------------------------------------------------------------
def _cls_head_kernel(x_ref, w1_ref, b1_ref, w2_ref, b2_ref, o_ref):
    # x: (TM, 768) f32 -> bf16 for the MXU; accumulate in f32.
    x = x_ref[...].astype(jnp.bfloat16)
    h = jnp.dot(x, w1_ref[...], preferred_element_type=jnp.float32) + b1_ref[...]
    h = jnp.maximum(h, 0.0)                                   # ReLU (f32)
    y = jnp.dot(h.astype(jnp.bfloat16), w2_ref[...],
                preferred_element_type=jnp.float32) + b2_ref[...]
    o_ref[...] = y.astype(o_ref.dtype)


def cls_forward(params, hidden_states, *, row_tile=256):
    """logits = critic(relu(state(dropout(hidden_states)))).

    params: {"w1": (768,48), "b1": (48,), "w2": (48,5), "b2": (5,)}
            (w1/w2 are the transposed nn.Linear weights, i.e. y = x @ w + b).
    """
    # TODO(synk): nn.Dropout(0.2) is stochastic; treated as inference-mode
    # identity here (PyTorch eval() behavior).
    lead = hidden_states.shape[:-1]
    K = hidden_states.shape[-1]
    assert K == IN_FEATURES

    x2d = hidden_states.reshape(-1, K).astype(jnp.float32)
    M = x2d.shape[0]

    # Lane-dense padded feature dims (multiples of 128).
    Np1 = _round_up(STATE_FEATURES, LANE)   # 48  -> 128
    Np2 = _round_up(NUM_CLASSES, LANE)      # 5   -> 128

    # Row tiling: multiple of 8 sublanes; pad rows so the grid divides evenly.
    tm = min(_round_up(M, SUBLANE), row_tile)
    m_pad = _round_up(M, tm)
    if m_pad != M:
        x2d = jnp.pad(x2d, ((0, m_pad - M), (0, 0)))

    # Zero-pad + pre-cast weights to bf16 (halves weight HBM traffic).
    w1 = jnp.zeros((K, Np1), jnp.bfloat16).at[:, :STATE_FEATURES].set(
        params["w1"].astype(jnp.bfloat16))
    b1 = jnp.zeros((1, Np1), jnp.float32).at[0, :STATE_FEATURES].set(
        params["b1"].astype(jnp.float32))
    w2 = jnp.zeros((Np1, Np2), jnp.bfloat16).at[:STATE_FEATURES, :NUM_CLASSES].set(
        params["w2"].astype(jnp.bfloat16))
    b2 = jnp.zeros((1, Np2), jnp.float32).at[0, :NUM_CLASSES].set(
        params["b2"].astype(jnp.float32))

    flops = 2 * m_pad * K * Np1 + 2 * m_pad * Np1 * Np2
    bytes_accessed = (x2d.size * 4 + w1.size * 2 + w2.size * 2
                      + b1.size * 4 + b2.size * 4 + m_pad * Np2 * 4)

    logits_pad = pl.pallas_call(
        _cls_head_kernel,
        out_shape=jax.ShapeDtypeStruct((m_pad, Np2), jnp.float32),
        grid=(m_pad // tm,),
        in_specs=[
            pl.BlockSpec((tm, K), lambda i: (i, 0)),     # activations, row-tiled
            pl.BlockSpec((K, Np1), lambda i: (0, 0)),    # W1 (resident)
            pl.BlockSpec((1, Np1), lambda i: (0, 0)),    # b1
            pl.BlockSpec((Np1, Np2), lambda i: (0, 0)),  # W2 (resident)
            pl.BlockSpec((1, Np2), lambda i: (0, 0)),    # b2
        ],
        out_specs=pl.BlockSpec((tm, Np2), lambda i: (i, 0)),
        compiler_params=pltpu.CompilerParams(
            dimension_semantics=("parallel",)),
        cost_estimate=pl.CostEstimate(
            flops=flops, transcendentals=0, bytes_accessed=bytes_accessed),
    )(x2d, w1, b1, w2, b2)

    logits = logits_pad[:M, :NUM_CLASSES]
    return logits.reshape(*lead, NUM_CLASSES)


# ----------------------------------------------------------------------------
# Driver
# ----------------------------------------------------------------------------
if __name__ == "__main__":
    key = jax.random.PRNGKey(0)
    k1, k2, k3, k4, kx = jax.random.split(key, 5)

    params = {
        "w1": jax.random.normal(k1, (IN_FEATURES, STATE_FEATURES), jnp.float32) * 0.02,
        "b1": jax.random.normal(k2, (STATE_FEATURES,), jnp.float32) * 0.02,
        "w2": jax.random.normal(k3, (STATE_FEATURES, NUM_CLASSES), jnp.float32) * 0.02,
        "b2": jax.random.normal(k4, (NUM_CLASSES,), jnp.float32) * 0.02,
    }

    B, S = 2, 8
    hidden_states = jax.random.normal(kx, (B, S, IN_FEATURES), jnp.float32)

    fwd = jax.jit(cls_forward)
    logits = fwd(params, hidden_states)
    jax.block_until_ready(logits)

    assert logits.shape == (B, S, NUM_CLASSES)

    # Plain-JAX f32 reference (dropout = identity at inference).
    x = hidden_states.reshape(-1, IN_FEATURES)
    ref = jnp.maximum(x @ params["w1"] + params["b1"], 0.0) @ params["w2"] + params["b2"]
    ref = ref.reshape(B, S, NUM_CLASSES)
    max_err = float(jnp.max(jnp.abs(logits - ref)))
    assert max_err < 5e-2, f"max abs error {max_err}"

    print("KERNEL_OK")
</pallas_src>

<mosaic_0001>
module attributes {stable_mosaic.version = 11 : i64} {
  func.func @_cls_head_kernel(%arg0: i32, %arg1: memref<16x768xf32, #tpu.memory_space<vmem>>, %arg2: memref<768x128xbf16, #tpu.memory_space<vmem>>, %arg3: memref<1x128xf32, #tpu.memory_space<vmem>>, %arg4: memref<128x128xbf16, #tpu.memory_space<vmem>>, %arg5: memref<1x128xf32, #tpu.memory_space<vmem>>, %arg6: memref<16x128xf32, #tpu.memory_space<vmem>>) attributes {dimension_semantics = [#tpu.dimension_semantics<parallel>], iteration_bounds = array<i64: 1>, scalar_prefetch = 0 : i64, scratch_operands = 0 : i64, tpu.core_type = #tpu.core_type<tc>, window_params = [{transform_indices = @transform_0, window_bounds = array<i64: 16, 768>}, {pipeline_mode = #tpu.pipeline_mode<synchronous>, transform_indices = @transform_1, window_bounds = array<i64: 768, 128>}, {pipeline_mode = #tpu.pipeline_mode<synchronous>, transform_indices = @transform_2, window_bounds = array<i64: 1, 128>}, {pipeline_mode = #tpu.pipeline_mode<synchronous>, transform_indices = @transform_3, window_bounds = array<i64: 128, 128>}, {pipeline_mode = #tpu.pipeline_mode<synchronous>, transform_indices = @transform_4, window_bounds = array<i64: 1, 128>}, {transform_indices = @transform_5, window_bounds = array<i64: 16, 128>}]} {
    %c0 = arith.constant 0 : index
    %c0_0 = arith.constant 0 : index
    %0 = vector.load %arg1[%c0, %c0_0] : memref<16x768xf32, #tpu.memory_space<vmem>>, vector<16x768xf32>
    %1 = arith.truncf %0 : vector<16x768xf32> to vector<16x768xbf16>
    %c0_1 = arith.constant 0 : index
    %c0_2 = arith.constant 0 : index
    %2 = vector.load %arg2[%c0_1, %c0_2] : memref<768x128xbf16, #tpu.memory_space<vmem>>, vector<768x128xbf16>
    %cst = arith.constant dense<0.000000e+00> : vector<16x128xf32>
    %3 = tpu.matmul %1, %2, %cst {dimension_numbers = #tpu.dot_dimension_numbers<[1], [0], [0], [1], [0, 0, 1, 1], [], []>} : vector<16x768xbf16>, vector<768x128xbf16>, vector<16x128xf32> -> vector<16x128xf32>
    %c0_3 = arith.constant 0 : index
    %c0_4 = arith.constant 0 : index
    %4 = vector.load %arg3[%c0_3, %c0_4] : memref<1x128xf32, #tpu.memory_space<vmem>>, vector<1x128xf32>
    %5 = vector.broadcast %4 : vector<1x128xf32> to vector<16x128xf32>
    %6 = arith.addf %3, %5 : vector<16x128xf32>
    %cst_5 = arith.constant 0.000000e+00 : f32
    %7 = vector.broadcast %cst_5 : f32 to vector<16x128xf32>
    %8 = arith.maximumf %6, %7 : vector<16x128xf32>
    %9 = arith.truncf %8 : vector<16x128xf32> to vector<16x128xbf16>
    %c0_6 = arith.constant 0 : index
    %c0_7 = arith.constant 0 : index
    %10 = vector.load %arg4[%c0_6, %c0_7] : memref<128x128xbf16, #tpu.memory_space<vmem>>, vector<128x128xbf16>
    %cst_8 = arith.constant dense<0.000000e+00> : vector<16x128xf32>
    %11 = tpu.matmul %9, %10, %cst_8 {dimension_numbers = #tpu.dot_dimension_numbers<[1], [0], [0], [1], [0, 0, 1, 1], [], []>} : vector<16x128xbf16>, vector<128x128xbf16>, vector<16x128xf32> -> vector<16x128xf32>
    %c0_9 = arith.constant 0 : index
    %c0_10 = arith.constant 0 : index
    %12 = vector.load %arg5[%c0_9, %c0_10] : memref<1x128xf32, #tpu.memory_space<vmem>>, vector<1x128xf32>
    %13 = vector.broadcast %12 : vector<1x128xf32> to vector<16x128xf32>
    %14 = arith.addf %11, %13 : vector<16x128xf32>
    %c0_11 = arith.constant 0 : index
    %c0_12 = arith.constant 0 : index
    %15 = vector.load %arg6[%c0_11, %c0_12] : memref<16x128xf32, #tpu.memory_space<vmem>>, vector<16x128xf32>
    tpu.vector_store %arg6[%c0_11, %c0_12], %14 {strides = array<i32>} : memref<16x128xf32, #tpu.memory_space<vmem>>, vector<16x128xf32>,
    return
  }
  func.func @transform_0(%arg0: i32) -> (i32, i32) {
    %c0_i32 = arith.constant 0 : i32
    %c0_i32_0 = arith.constant 0 : i32
    return %arg0, %c0_i32 : i32, i32
  }
  func.func @transform_1(%arg0: i32) -> (i32, i32) {
    %c0_i32 = arith.constant 0 : i32
    %c0_i32_0 = arith.constant 0 : i32
    %c0_i32_1 = arith.constant 0 : i32
    return %c0_i32, %c0_i32_0 : i32, i32
  }
  func.func @transform_2(%arg0: i32) -> (i32, i32) {
    %c0_i32 = arith.constant 0 : i32
    %c0_i32_0 = arith.constant 0 : i32
    %c0_i32_1 = arith.constant 0 : i32
    return %c0_i32, %c0_i32_0 : i32, i32
  }
  func.func @transform_3(%arg0: i32) -> (i32, i32) {
    %c0_i32 = arith.constant 0 : i32
    %c0_i32_0 = arith.constant 0 : i32
    %c0_i32_1 = arith.constant 0 : i32
    return %c0_i32, %c0_i32_0 : i32, i32
  }
  func.func @transform_4(%arg0: i32) -> (i32, i32) {
    %c0_i32 = arith.constant 0 : i32
    %c0_i32_0 = arith.constant 0 : i32
    %c0_i32_1 = arith.constant 0 : i32
    return %c0_i32, %c0_i32_0 : i32, i32
  }
  func.func @transform_5(%arg0: i32) -> (i32, i32) {
    %c0_i32 = arith.constant 0 : i32
    %c0_i32_0 = arith.constant 0 : i32
    return %arg0, %c0_i32 : i32, i32
  }
}

</mosaic_0001>

<bundles_post_ra>
// kernel: cls_forward.1
= control target key start
LH: loop header
LB: loop body
LE: loop exit
PB: predicated region body
PF: predicated region fallthrough
CT: control target
= control target key end

     0   :  { %vm886_vm0 = vmmov 0   ;;  %s1133_s1 = inlined_call_operand.vmem [shape: bf16[768,128], index: 1, kind: input, shape index: {}]   ;;  %s1134_s0 = inlined_call_operand.vmem [shape: f32[16,768], index: 0, kind: input, shape index: {}]   ;;  %s1135_s3 = inlined_call_operand.vmem [shape: bf16[128,128], index: 3, kind: input, shape index: {}]   ;;  %s1136_s2 = inlined_call_operand.vmem [shape: f32[1,128], index: 2, kind: input, shape index: {}]   ;;  %s1137_s4 = inlined_call_operand.vmem [shape: f32[1,128], index: 4, kind: input, shape index: {}]   ;;  %s1138_s5 = inlined_call_operand.vmem [shape: f32[16,128], index: 5, kind: output, shape index: {}]  }
   0x1   :  { %v829_v0 = vld [vmem:[%s1133_s1 + $0x40] sm:$0xff]   ;;  %v833_v4 = vld [vmem:[%s1133_s1 + $0x48] sm:$0xff]   ;;  %v837_v8 = vld [vmem:[%s1133_s1 + $0x50] sm:$0xff]  }
   0x2   :  { %v830_v1 = vld [vmem:[%s1133_s1] sm:$0xff]   ;;  %732 = vmatprep.subr.bf16.mxu0 %v829_v0  ;;  %v834_v5 = vld [vmem:[%s1133_s1 + $0x8] sm:$0xff]   ;;  %v838_v9 = vld [vmem:[%s1133_s1 + $0x10] sm:$0xff]  }
   0x3   :  { %v831_v2 = vld [vmem:[%s1133_s1 + $0xc0] sm:$0xff]   ;;  %733 = vmatpush3.bf16.msra.mxu0 %v830_v1  ;;  %v835_v6 = vld [vmem:[%s1133_s1 + $0xc8] sm:$0xff]   ;;  %v839_v10 = vld [vmem:[%s1133_s1 + $0xd0] sm:$0xff]  }
   0x4   :  { %v832_v3 = vld [vmem:[%s1133_s1 + $0x80] sm:$0xff]   ;;  %754 = vmatprep.subr.bf16.mxu1 %v831_v2  ;;  %734 = vmatprep.subr.bf16.mxu0 %v833_v4  ;;  %v836_v7 = vld [vmem:[%s1133_s1 + $0x88] sm:$0xff]   ;;  %v840_v11 = vld [vmem:[%s1133_s1 + $0x90] sm:$0xff]   ;;  %v885_v2 = vmov 0.0  }
   0x5   :  { %755 = vmatpush3.bf16.msra.mxu1 %v832_v3  ;;  %v841_v12 = vld [vmem:[%s1133_s1 + $0x58] sm:$0xff]   ;;  %v845_v16 = vld [vmem:[%s1133_s1 + $0x60] sm:$0xff]   ;;  %v849_v20 = vld [vmem:[%s1133_s1 + $0x68] sm:$0xff]  }
   0x6   :  { %756 = vmatprep.subr.bf16.mxu1 %v835_v6  ;;  %v842_v13 = vld [vmem:[%s1133_s1 + $0x18] sm:$0xff]   ;;  %v846_v17 = vld [vmem:[%s1133_s1 + $0x20] sm:$0xff]   ;;  %v850_v21 = vld [vmem:[%s1133_s1 + $0x28] sm:$0xff]  }
   0x7   :  { %735 = vmatpush3.bf16.msra.mxu0 %v834_v5  ;;  %v843_v14 = vld [vmem:[%s1133_s1 + $0xd8] sm:$0xff]   ;;  %v847_v18 = vld [vmem:[%s1133_s1 + $0xe0] sm:$0xff]   ;;  %v851_v22 = vld [vmem:[%s1133_s1 + $0xe8] sm:$0xff]  }
   0x8   :  { %736 = vmatprep.subr.bf16.mxu0 %v837_v8  ;;  %v844_v15 = vld [vmem:[%s1133_s1 + $0x98] sm:$0xff]   ;;  %v848_v19 = vld [vmem:[%s1133_s1 + $0xa0] sm:$0xff]   ;;  %v852_v23 = vld [vmem:[%s1133_s1 + $0xa8] sm:$0xff]  }
   0x9   :  { %757 = vmatpush3.bf16.msra.mxu1 %v836_v7  ;;  %v853_v24 = vld [vmem:[%s1133_s1 + $0x70] sm:$0xff]   ;;  %v857_v28 = vld [vmem:[%s1133_s1 + $0x78] sm:$0xff]   ;;  %v22_v31 = vld [vmem:[%s1134_s0 + $0x8] sm:$0xff] }
   0xa   :  { %758 = vmatprep.subr.bf16.mxu1 %v839_v10  ;;  %v854_v25 = vld [vmem:[%s1133_s1 + $0x30] sm:$0xff]   ;;  %v858_v29 = vld [vmem:[%s1133_s1 + $0x38] sm:$0xff]   ;;  %v21_v35 = vld [vmem:[%s1134_s0] sm:$0xff] }
   0xb   :  { %737 = vmatpush3.bf16.msra.mxu0 %v838_v9  ;;  %v855_v26 = vld [vmem:[%s1133_s1 + $0xf0] sm:$0xff]   ;;  %v859_v30 = vld [vmem:[%s1133_s1 + $0xf8] sm:$0xff]   ;;  %v861_v38 = vld [vmem:[%s1133_s1 + $0x140] sm:$0xff]  }
   0xc   :  { %738 = vmatprep.subr.bf16.mxu0 %v841_v12  ;;  %v856_v27 = vld [vmem:[%s1133_s1 + $0xb0] sm:$0xff]   ;;  %v28_v32 = vld [vmem:[%s1134_s0 + $0x38] sm:$0xff]  ;;  %v30_v40 = vld [vmem:[%s1134_s0 + $0x48] sm:$0xff] }
   0xd   :  { %759 = vmatpush3.bf16.msra.mxu1 %v840_v11  ;;  %v34_v33 = vpack.c.bf16 %v28_v32, %v22_v31  ;;  %v860_v34 = vld [vmem:[%s1133_s1 + $0xb8] sm:$0xff]   ;;  %v27_v36 = vld [vmem:[%s1134_s0 + $0x30] sm:$0xff]  ;;  %v862_v42 = vld [vmem:[%s1133_s1 + $0x100] sm:$0xff]  }
   0xe   :  { %760 = vmatprep.subr.bf16.mxu1 %v843_v14  ;;  %v33_v37 = vpack.c.bf16 %v27_v36, %v21_v35  ;;  %v24_v39 = vld [vmem:[%s1134_s0 + $0x18] sm:$0xff]  ;;  %v23_v43 = vld [vmem:[%s1134_s0 + $0x10] sm:$0xff]  ;;  %v29_v44 = vld [vmem:[%s1134_s0 + $0x40] sm:$0xff] }
   0xf   :  { %739 = vmatpush3.bf16.msra.mxu0 %v842_v13  ;;  %462 = vmatprep.mubr.bf16.mxu0 %v34_v33  ;;  %v36_v41 = vpack.c.bf16 %v30_v40, %v24_v39  ;;  %v35_v45 = vpack.c.bf16 %v29_v44, %v23_v43  ;;  %v863_v46 = vld [vmem:[%s1133_s1 + $0x148] sm:$0xff]   ;;  %v865_v48 = vld [vmem:[%s1133_s1 + $0x150] sm:$0xff]   ;;  %v867_v50 = vld [vmem:[%s1133_s1 + $0x158] sm:$0xff]  }
  0x10   :  { %740 = vmatprep.subr.bf16.mxu0 %v845_v16  ;;  %v864_v47 = vld [vmem:[%s1133_s1 + $0x108] sm:$0xff]   ;;  %v866_v49 = vld [vmem:[%s1133_s1 + $0x110] sm:$0xff]   ;;  %v868_v51 = vld [vmem:[%s1133_s1 + $0x118] sm:$0xff]  }
  0x11   :  { %761 = vmatpush3.bf16.msra.mxu1 %v844_v15  ;;  %503 = vmatprep.mubr.bf16.mxu1 %v36_v41  ;;  %v869_v52 = vld [vmem:[%s1133_s1 + $0x160] sm:$0xff]   ;;  %v871_v54 = vld [vmem:[%s1133_s1 + $0x168] sm:$0xff]   ;;  %v32_v56 = vld [vmem:[%s1134_s0 + $0x58] sm:$0xff] }
  0x12   :  { %762 = vmatprep.subr.bf16.mxu1 %v847_v18  ;;  %v870_v53 = vld [vmem:[%s1133_s1 + $0x120] sm:$0xff]   ;;  %v26_v55 = vld [vmem:[%s1134_s0 + $0x28] sm:$0xff]  ;;  %v873_v59 = vld [vmem:[%s1133_s1 + $0x170] sm:$0xff]  }
  0x13   :  { %741 = vmatpush3.bf16.msra.mxu0 %v846_v17  ;;  %v38_v57 = vpack.c.bf16 %v32_v56, %v26_v55  ;;  %v872_v58 = vld [vmem:[%s1133_s1 + $0x128] sm:$0xff]   ;;  %v874_v60 = vld [vmem:[%s1133_s1 + $0x130] sm:$0xff]   ;;  %v875_v61 = vld [vmem:[%s1133_s1 + $0x178] sm:$0xff]  }
  0x14   :  { %742 = vmatprep.subr.bf16.mxu0 %v849_v20  ;;  %v876_v62 = vld [vmem:[%s1133_s1 + $0x138] sm:$0xff]   ;;  %v25_v63 = vld [vmem:[%s1134_s0 + $0x20] sm:$0xff]  ;;  %v31_v0 = vld [vmem:[%s1134_s0 + $0x50] sm:$0xff] }
  0x15   :  { %763 = vmatpush3.bf16.msra.mxu1 %v848_v19  ;;  %v37_v1 = vpack.c.bf16 %v31_v0, %v25_v63  ;;  %v877_v3 = vld [vmem:[%s1135_s3] sm:$0xff]   ;;  %v878_v4 = vld [vmem:[%s1135_s3 + $0x8] sm:$0xff]   ;;  %v879_v5 = vld [vmem:[%s1135_s3 + $0x10] sm:$0xff]  }
  0x16   :  { %764 = vmatprep.subr.bf16.mxu1 %v851_v22  ;;  %v880_v6 = vld [vmem:[%s1135_s3 + $0x18] sm:$0xff]   ;;  %v881_v7 = vld [vmem:[%s1135_s3 + $0x20] sm:$0xff]   ;;  %v882_v8 = vld [vmem:[%s1135_s3 + $0x28] sm:$0xff]  }
  0x17   :  { %743 = vmatpush3.bf16.msra.mxu0 %v850_v21  ;;  %v883_v9 = vld [vmem:[%s1135_s3 + $0x30] sm:$0xff]   ;;  %v884_v10 = vld [vmem:[%s1135_s3 + $0x38] sm:$0xff]   ;;  %v674_v12 = vld [vmem:[%s1136_s2] ss:$0 sm:$0xff] }
  0x18   :  { %744 = vmatprep.subr.bf16.mxu0 %v853_v24  ;;  %v723_v39 = vld [vmem:[%s1137_s4] ss:$0 sm:$0xff] }
  0x19   :  { %765 = vmatpush3.bf16.msra.mxu1 %v852_v23 }
  0x1a   :  { %766 = vmatprep.subr.bf16.mxu1 %v855_v26 }
  0x1b   :  { %745 = vmatpush3.bf16.msra.mxu0 %v854_v25 }
  0x1c   :  { %746 = vmatprep.subr.bf16.mxu0 %v857_v28 }
  0x1d   :  { %767 = vmatpush3.bf16.msra.mxu1 %v856_v27 }
  0x1e   :  { %768 = vmatprep.subr.bf16.mxu1 %v859_v30 }
  0x1f   :  { %747 = vmatpush3.bf16.msra.mxu0 %v858_v29 }
  0x20   :  { %776 = vmatprep.subr.bf16.mxu0 %v861_v38 }
  0x21   :  { %769 = vmatpush3.bf16.msra.mxu1 %v860_v34 }
  0x22   :  { %463 = vmatmul.mubr.bf16.vlgmr.msra.gmra.mrb[0].mxu0 %v33_v37  ;;  %807 = vmatprep.subr.bf16.mxu1 %v885_v2 }
  0x23   :  { %777 = vmatpush3.bf16.msra.mxu0 %v862_v42  ;;  %544 = vmatprep.mubr.bf16.mxu0 %v38_v57 }
  0x24   :  { %504 = vmatmul.mubr.bf16.vlgmr.msra.gmra.mrb[0].mxu1 %v35_v45  ;;  %778 = vmatprep.subr.bf16.mxu0 %v863_v46 }
  0x25   :  { %808 = vmatpush3.bf16.msra.mxu1 %v877_v3  ;;  %823 = vmatprep.mubr.msk.bf16.mxu1 %vm886_vm0, %v885_v2 }
  0x26   :  { %809 = vmatprep.subr.bf16.mxu1 %v885_v2 }
  0x27   :  { %779 = vmatpush3.bf16.msra.mxu0 %v864_v47 }
  0x28   :  { %780 = vmatprep.subr.bf16.mxu0 %v865_v48 }
  0x29   :  { %810 = vmatpush3.bf16.msra.mxu1 %v878_v4 }
  0x2a   :  { %811 = vmatprep.subr.bf16.mxu1 %v885_v2 }
  0x2b   :  { %781 = vmatpush3.bf16.msra.mxu0 %v866_v49 }
  0x2c   :  { %782 = vmatprep.subr.bf16.mxu0 %v867_v50 }
  0x2d   :  { %812 = vmatpush3.bf16.msra.mxu1 %v879_v5 }
  0x2e   :  { %813 = vmatprep.subr.bf16.mxu1 %v885_v2 }
  0x2f   :  { %783 = vmatpush3.bf16.msra.mxu0 %v868_v51 }
  0x30   :  { %784 = vmatprep.subr.bf16.mxu0 %v869_v52 }
  0x31   :  { %814 = vmatpush3.bf16.msra.mxu1 %v880_v6 }
  0x32   :  { %815 = vmatprep.subr.bf16.mxu1 %v885_v2 }
  0x33   :  { %785 = vmatpush3.bf16.msra.mxu0 %v870_v53 }
  0x34   :  { %786 = vmatprep.subr.bf16.mxu0 %v871_v54 }
  0x35   :  { %816 = vmatpush3.bf16.msra.mxu1 %v881_v7 }
  0x36   :  { %817 = vmatprep.subr.bf16.mxu1 %v885_v2 }
  0x37   :  { %787 = vmatpush3.bf16.msra.mxu0 %v872_v58 }
  0x38   :  { %788 = vmatprep.subr.bf16.mxu0 %v873_v59 }
  0x39   :  { %818 = vmatpush3.bf16.msra.mxu1 %v882_v8 }
  0x3a   :  { %819 = vmatprep.subr.bf16.mxu1 %v885_v2 }
  0x3b   :  { %789 = vmatpush3.bf16.msra.mxu0 %v874_v60 }
  0x3c   :  { %790 = vmatprep.subr.bf16.mxu0 %v875_v61 }
  0x3d   :  { %820 = vmatpush3.bf16.msra.mxu1 %v883_v9 }
  0x3e   :  { %821 = vmatprep.subr.bf16.mxu1 %v885_v2 }
  0x3f   :  { %791 = vmatpush3.bf16.msra.mxu0 %v876_v62 }
  0x41   :  { %822 = vmatpush3.bf16.msra.mxu1 %v884_v10 }
  0x42   :  { %545 = vmatmul.mubr.bf16.vlgmr.msra.gmra.mrb[4].mxu0 %v37_v1 }
  0xf5   :  { %v748_v11 = vpop.f32.mrb[0].mxu0 }
  0xf6   :  { %v749_v13 = vpop.f32.mrb[1].mxu0 }
  0xf7   :  { %v750_v14 = vadd.f32 %v749_v13, %v748_v11  ;;  %v751_v15 = vpop.f32.mrb[2].mxu0  ;;  %v770_v16 = vpop.f32.mrb[0].mxu1 }
  0xf8   :  { %v752_v17 = vpop.f32.mrb[3].mxu0  ;;  %v771_v20 = vpop.f32.mrb[1].mxu1 }
  0xf9   :  { %v465_v18 = vadd.f32 %v750_v14, %v674_v12  ;;  %v753_v19 = vadd.f32 %v752_v17, %v751_v15  ;;  %v772_v21 = vadd.f32 %v771_v20, %v770_v16  ;;  %v773_v22 = vpop.f32.mrb[2].mxu1 }
  0xfa   :  { %v774_v24 = vpop.f32.mrb[3].mxu1 }
  0xfb   :  { %v468_v23 = vadd.f32 %v753_v19, %v674_v12  ;;  %v506_v25 = vadd.f32 %v772_v21, %v465_v18  ;;  %v775_v26 = vadd.f32 %v774_v24, %v773_v22 }
  0xfd   :  { %v509_v27 = vadd.f32 %v775_v26, %v468_v23 }
 0x115   :  { %v792_v28 = vpop.f32.mrb[4].mxu0 }
 0x116   :  { %v793_v29 = vpop.f32.mrb[5].mxu0 }
 0x117   :  { %v794_v30 = vadd.f32 %v793_v29, %v792_v28  ;;  %v795_v31 = vpop.f32.mrb[6].mxu0 }
 0x118   :  { %v796_v32 = vpop.f32.mrb[7].mxu0 }
 0x119   :  { %v547_v33 = vadd.f32 %v794_v30, %v506_v25  ;;  %v797_v34 = vadd.f32 %v796_v32, %v795_v31 }
 0x11b   :  { %v550_v35 = vadd.f32 %v797_v34, %v509_v27  ;;  %v553_v36 = vmax.f32 %v547_v33, 0.0 }
 0x11d   :  { %v554_v37 = vmax.f32 %v550_v35, 0.0 }
 0x11f   :  { %v555_v38 = vpack.c.bf16 %v554_v37, %v553_v36 }
 0x121   :  { %824 = vmatmul.mubr.bf16.vlgmr.msra.gmra.mrb[4].mxu1 %v555_v38 }
 0x1f4   :  { %v661_v40 = vpop.f32.mrb[4].mxu1 }
 0x1f5   :  { %v662_v41 = vadd.f32 %v723_v39, %v661_v40  ;;  %v825_v42 = vpop.f32.mrb[5].mxu1 }
 0x1f6   :  { %v664_v43 = vpop.f32.mrb[6].mxu1 }
 0x1f7   :  { %668 = vst [vmem:[%s1138_s5] sm:$0xff] %v662_v41  ;;  %v665_v44 = vadd.f32 %v723_v39, %v664_v43  ;;  %v826_v45 = vpop.f32.mrb[7].mxu1 }
 0x1f9   :  { %669 = vst [vmem:[%s1138_s5 + $0x8] sm:$0xff] %v665_v44 }

</bundles_post_ra>
